<compile_context>
chip_gen: v5e
topology: v5e:2x2
jax: 0.10.0
libtpu: 0.0.40
codegen_flags: <defaults>
</compile_context>

<pallas_src>
import functools

import jax
import jax.numpy as jnp
from jax import lax
from jax.experimental import pallas as pl
from jax.experimental.pallas import tpu as pltpu

_LANES = 128


# --------------------------------------------------------------------------------------
# Tiling / budget helpers
# --------------------------------------------------------------------------------------
def _pick_tile(dim: int, cap: int) -> int:
    """Largest 128- (preferred) or 8-aligned divisor of `dim` that is <= cap.

    Falls back to the full dim (a block equal to the array dim is exempt from the
    (8, 128) divisibility rule) rather than ever returning an unaligned divisor."""
    if dim <= cap:
        return dim
    for align in (128, 8):
        t = (cap // align) * align
        while t >= align:
            if dim % t == 0:
                return t
            t -= align
    return dim


def _tpu_budget():
    """(vmem_limit_bytes, tile_cap) tuned to the local generation's VMEM capacity."""
    try:
        cap = pltpu.get_tpu_info().vmem_capacity_bytes
    except Exception:  # conservative fallback if the query is unavailable
        cap = 64 * 1024 * 1024
    if cap >= 100 * 1024 * 1024:          # v5e / v6e: 128 MiB VMEM -> bigger tiles
        return 80 * 1024 * 1024, 512
    return 44 * 1024 * 1024, 256          # v7x: 64 MiB per TensorCore -> stay modest


def _bcast_cols(x, n):
    """Broadcast a (rows, 128) array whose columns are all identical to (rows, n)."""
    lanes = x.shape[-1]
    if n == lanes:
        return x
    if n % lanes == 0:
        return jnp.tile(x, (1, n // lanes))
    return jnp.broadcast_to(x[:, :1], (x.shape[0], n))


# --------------------------------------------------------------------------------------
# Kernel 1: tiled linear projection  y = x @ W.T  (PyTorch Linear, no bias)
# --------------------------------------------------------------------------------------
def _linear_kernel(x_ref, w_ref, o_ref, acc_ref, *, scale: float):
    k_i = pl.program_id(2)

    @pl.when(k_i == 0)
    def _init():
        acc_ref[...] = jnp.zeros_like(acc_ref)

    # W is kept in its PyTorch (out, in) layout; contract directly on the 'in' axis so
    # the wrapper never materializes W.T.  Native dtype in, f32 accumulation on the MXU.
    acc_ref[...] += lax.dot_general(
        x_ref[...], w_ref[...],
        dimension_numbers=(((1,), (1,)), ((), ())),
        preferred_element_type=jnp.float32)

    @pl.when(k_i == pl.num_programs(2) - 1)
    def _finalize():
        out = acc_ref[...]
        if scale != 1.0:           # softmax scale folded into the Q projection (O(S*D))
            out = out * scale
        o_ref[...] = out.astype(o_ref.dtype)


def _linear(x2d, w, *, scale: float = 1.0):
    """x2d: (M, Din), w: (Dout, Din) -> (M, Dout)."""
    vmem_limit, cap = _tpu_budget()
    M, K = x2d.shape
    N = w.shape[0]
    tm = _pick_tile(M, cap)
    tn = _pick_tile(N, cap)
    tk = _pick_tile(K, cap)

    kernel = functools.partial(_linear_kernel, scale=scale)
    return pl.pallas_call(
        kernel,
        out_shape=jax.ShapeDtypeStruct((M, N), x2d.dtype),
        grid_spec=pltpu.PrefetchScalarGridSpec(
            num_scalar_prefetch=0,
            grid=(M // tm, N // tn, K // tk),
            in_specs=[
                pl.BlockSpec((tm, tk), lambda i, j, k: (i, k)),   # activations
                pl.BlockSpec((tn, tk), lambda i, j, k: (j, k)),   # weight (out, in)
            ],
            out_specs=pl.BlockSpec((tm, tn), lambda i, j, k: (i, j)),
            scratch_shapes=[pltpu.VMEM((tm, tn), jnp.float32)],
        ),
        compiler_params=pltpu.CompilerParams(
            dimension_semantics=("parallel", "parallel", "arbitrary"),
            vmem_limit_bytes=vmem_limit),
    )(x2d, w)


# --------------------------------------------------------------------------------------
# Kernel 2: flash-style attention over already-projected q/k/v (B, H, S, head_dim)
# --------------------------------------------------------------------------------------
def _flash_attn_kernel(q_ref, k_ref, v_ref, o_ref, m_sc, l_sc, acc_sc):
    kv_i = pl.program_id(3)

    @pl.when(kv_i == 0)
    def _init():
        m_sc[...] = jnp.full(m_sc.shape, -jnp.inf, dtype=m_sc.dtype)
        l_sc[...] = jnp.zeros(l_sc.shape, dtype=l_sc.dtype)
        acc_sc[...] = jnp.zeros(acc_sc.shape, dtype=acc_sc.dtype)

    q = q_ref[0, 0]                                    # (tq, hd)  native dtype -> MXU
    k = k_ref[0, 0]                                    # (tk, hd)
    v = v_ref[0, 0]                                    # (tk, hd)

    # q already carries the 1/sqrt(head_dim) scale (folded into the Q projection).
    s = lax.dot_general(q, k, dimension_numbers=(((1,), (1,)), ((), ())),
                        preferred_element_type=jnp.float32)          # (tq, tk) f32

    # Online softmax; statistics kept lane-dense (tq, 128) in f32.
    m_prev = m_sc[...]
    l_prev = l_sc[...]
    m_cur = jnp.max(s, axis=-1, keepdims=True)                        # (tq, 1)
    m_next = jnp.maximum(m_prev, m_cur)                               # (tq, 128)
    alpha = jnp.exp(m_prev - m_next)                                  # (tq, 128)

    p = jnp.exp(s - _bcast_cols(m_next, s.shape[-1]))                 # (tq, tk) f32
    l_sc[...] = alpha * l_prev + jnp.broadcast_to(
        jnp.sum(p, axis=-1, keepdims=True), l_prev.shape)
    acc_sc[...] = (_bcast_cols(alpha, acc_sc.shape[-1]) * acc_sc[...]
                   + jnp.dot(p.astype(v.dtype), v,
                             preferred_element_type=jnp.float32))
    m_sc[...] = m_next

    @pl.when(kv_i == pl.num_programs(3) - 1)
    def _finalize():
        # Deferred normalization; reciprocal goes to the EUP slot (not a VPU divide).
        # TODO(synk): guard l against all-masked rows if an attention_mask path is added.
        inv_l = pl.reciprocal(l_sc[...], approx=False)
        o_ref[0, 0] = (acc_sc[...] * _bcast_cols(inv_l, acc_sc.shape[-1])
                       ).astype(o_ref.dtype)


def _flash_attention(q, k, v):
    """q/k/v: (B, H, S, head_dim) -> context (B, H, S, head_dim)."""
    vmem_limit, cap = _tpu_budget()
    B, H, S, hd = q.shape
    tq = _pick_tile(S, cap)
    tk = _pick_tile(S, cap)
    nq, nk = S // tq, S // tk

    return pl.pallas_call(
        _flash_attn_kernel,
        out_shape=jax.ShapeDtypeStruct((B, H, S, hd), q.dtype),
        grid_spec=pltpu.PrefetchScalarGridSpec(
            num_scalar_prefetch=0,
            grid=(B, H, nq, nk),
            in_specs=[
                pl.BlockSpec((1, 1, tq, hd), lambda b, h, qi, ki: (b, h, qi, 0)),
                pl.BlockSpec((1, 1, tk, hd), lambda b, h, qi, ki: (b, h, ki, 0)),
                pl.BlockSpec((1, 1, tk, hd), lambda b, h, qi, ki: (b, h, ki, 0)),
            ],
            out_specs=pl.BlockSpec((1, 1, tq, hd), lambda b, h, qi, ki: (b, h, qi, 0)),
            scratch_shapes=[
                pltpu.VMEM((tq, _LANES), jnp.float32),   # running max (lane-dense)
                pltpu.VMEM((tq, _LANES), jnp.float32),   # running denom (lane-dense)
                pltpu.VMEM((tq, hd), jnp.float32),       # output accumulator
            ],
        ),
        compiler_params=pltpu.CompilerParams(
            dimension_semantics=("parallel", "parallel", "parallel", "arbitrary"),
            vmem_limit_bytes=vmem_limit),
    )(q, k, v)


# --------------------------------------------------------------------------------------
# Full module forward
# --------------------------------------------------------------------------------------
def self_attention(hidden_states, wq, wk, wv, wo, *, num_heads: int):
    """hidden_states: (B, S, D); w*: PyTorch Linear weights of shape (D, D) = (out, in)."""
    B, S, D = hidden_states.shape
    assert D % num_heads == 0
    head_dim = D // num_heads
    scale = head_dim ** (-0.5)

    x2d = hidden_states.reshape(B * S, D)

    # Projections run once each (hoisted out of the kv-reduction loop); the softmax
    # scale is folded into the Q projection's finalize step.
    q2d = _linear(x2d, wq, scale=scale)
    k2d = _linear(x2d, wk)
    v2d = _linear(x2d, wv)

    def to_heads(t2d):   # (B*S, D) -> (B, H, S, head_dim)
        return t2d.reshape(B, S, num_heads, head_dim).transpose(0, 2, 1, 3)

    ctx = _flash_attention(to_heads(q2d), to_heads(k2d), to_heads(v2d))  # (B, H, S, hd)
    ctx2d = ctx.transpose(0, 2, 1, 3).reshape(B * S, D)

    out2d = _linear(ctx2d, wo)
    return out2d.reshape(B, S, D)


# --------------------------------------------------------------------------------------
# Plain-JAX reference (mirrors the PyTorch forward with rotary_emb=None, no mask/cache)
# --------------------------------------------------------------------------------------
def _reference(hidden_states, wq, wk, wv, wo, *, num_heads: int):
    B, S, D = hidden_states.shape
    hd = D // num_heads
    x = hidden_states.astype(jnp.float32)

    def proj(w):  # PyTorch Linear: y = x @ w.T
        return jnp.einsum('bsd,ed->bse', x, w.astype(jnp.float32))

    def shape(t):  # (B,S,D) -> (B,H,S,hd)
        return t.reshape(B, S, num_heads, hd).transpose(0, 2, 1, 3)

    q, k, v = shape(proj(wq)), shape(proj(wk)), shape(proj(wv))
    attn = jnp.einsum('bhqd,bhkd->bhqk', q, k) * (hd ** -0.5)
    attn = jax.nn.softmax(attn, axis=-1)
    ctx = jnp.einsum('bhqk,bhkd->bhqd', attn, v)
    ctx = ctx.transpose(0, 2, 1, 3).reshape(B, S, D)
    return jnp.einsum('bsd,ed->bse', ctx, wo.astype(jnp.float32))


if __name__ == "__main__":
    # Small shapes consistent with the module.
    batch, seq_len, hidden_dim, num_heads = 2, 8, 32, 4

    key = jax.random.PRNGKey(0)
    kx, kq, kk, kv_, ko = jax.random.split(key, 5)

    x = jax.random.normal(kx, (batch, seq_len, hidden_dim), dtype=jnp.float32)
    # torch.nn.init.normal_(weight, mean=0.0, std=0.02); weight shape (out, in).
    wq = 0.02 * jax.random.normal(kq, (hidden_dim, hidden_dim), dtype=jnp.float32)
    wk = 0.02 * jax.random.normal(kk, (hidden_dim, hidden_dim), dtype=jnp.float32)
    wv = 0.02 * jax.random.normal(kv_, (hidden_dim, hidden_dim), dtype=jnp.float32)
    wo = 0.02 * jax.random.normal(ko, (hidden_dim, hidden_dim), dtype=jnp.float32)

    out = self_attention(x, wq, wk, wv, wo, num_heads=num_heads)
    out = jax.block_until_ready(out)

    ref = _reference(x, wq, wk, wv, wo, num_heads=num_heads)
    assert out.shape == (batch, seq_len, hidden_dim)
    assert jnp.allclose(out, ref, atol=1e-4, rtol=1e-4), "mismatch vs reference"

    # TODO(synk): rotary_emb / attention_mask / kv_cache paths are not exercised
    # (module is instantiated with rotary_emb=None and forward defaults).
    print("KERNEL_OK")
</pallas_src>

<mosaic_0001>
module attributes {stable_mosaic.version = 11 : i64} {
  func.func @_linear_kernel(%arg0: i32, %arg1: i32, %arg2: i32, %arg3: memref<16x32xf32, #tpu.memory_space<vmem>>, %arg4: memref<32x32xf32, #tpu.memory_space<vmem>>, %arg5: memref<16x32xf32, #tpu.memory_space<vmem>>, %arg6: memref<16x32xf32, #tpu.memory_space<vmem>>) attributes {dimension_semantics = [#tpu.dimension_semantics<parallel>, #tpu.dimension_semantics<parallel>, #tpu.dimension_semantics<arbitrary>], iteration_bounds = array<i64: 1, 1, 1>, scalar_prefetch = 0 : i64, scratch_operands = 1 : i64, tpu.core_type = #tpu.core_type<tc>, window_params = [{transform_indices = @transform_0, window_bounds = array<i64: 16, 32>}, {transform_indices = @transform_1, window_bounds = array<i64: 32, 32>}, {transform_indices = @transform_2, window_bounds = array<i64: 16, 32>}]} {
    %c0_i32 = arith.constant 0 : i32
    %0 = arith.cmpi eq, %arg2, %c0_i32 : i32
    %1 = arith.extui %0 : i1 to i32
    %c0_i32_0 = arith.constant 0 : i32
    %2 = arith.cmpi ne, %1, %c0_i32_0 : i32
    scf.if %2 {
      %cst_10 = arith.constant 0.000000e+00 : f32
      %12 = vector.broadcast %cst_10 : f32 to vector<16x32xf32>
      %c0_11 = arith.constant 0 : index
      %c0_12 = arith.constant 0 : index
      %13 = vector.load %arg6[%c0_11, %c0_12] : memref<16x32xf32, #tpu.memory_space<vmem>>, vector<16x32xf32>
      tpu.vector_store %arg6[%c0_11, %c0_12], %12 {strides = array<i32>} : memref<16x32xf32, #tpu.memory_space<vmem>>, vector<16x32xf32>,
    } else {
    }
    %c0 = arith.constant 0 : index
    %c0_1 = arith.constant 0 : index
    %3 = vector.load %arg6[%c0, %c0_1] : memref<16x32xf32, #tpu.memory_space<vmem>>, vector<16x32xf32>
    %c0_2 = arith.constant 0 : index
    %c0_3 = arith.constant 0 : index
    %4 = vector.load %arg3[%c0_2, %c0_3] : memref<16x32xf32, #tpu.memory_space<vmem>>, vector<16x32xf32>
    %c0_4 = arith.constant 0 : index
    %c0_5 = arith.constant 0 : index
    %5 = vector.load %arg4[%c0_4, %c0_5] : memref<32x32xf32, #tpu.memory_space<vmem>>, vector<32x32xf32>
    %cst = arith.constant dense<0.000000e+00> : vector<16x32xf32>
    %6 = tpu.matmul %4, %5, %cst {dimension_numbers = #tpu.dot_dimension_numbers<[1], [1], [0], [0], [0, 0, 1, 0], [], []>} : vector<16x32xf32>, vector<32x32xf32>, vector<16x32xf32> -> vector<16x32xf32>
    %7 = arith.addf %3, %6 : vector<16x32xf32>
    %c0_6 = arith.constant 0 : index
    %c0_7 = arith.constant 0 : index
    %8 = vector.load %arg6[%c0_6, %c0_7] : memref<16x32xf32, #tpu.memory_space<vmem>>, vector<16x32xf32>
    tpu.vector_store %arg6[%c0_6, %c0_7], %7 {strides = array<i32>} : memref<16x32xf32, #tpu.memory_space<vmem>>, vector<16x32xf32>,
    %c0_i32_8 = arith.constant 0 : i32
    %9 = arith.cmpi eq, %arg2, %c0_i32_8 : i32
    %10 = arith.extui %9 : i1 to i32
    %c0_i32_9 = arith.constant 0 : i32
    %11 = arith.cmpi ne, %10, %c0_i32_9 : i32
    scf.if %11 {
      %c0_10 = arith.constant 0 : index
      %c0_11 = arith.constant 0 : index
      %12 = vector.load %arg6[%c0_10, %c0_11] : memref<16x32xf32, #tpu.memory_space<vmem>>, vector<16x32xf32>
      %cst_12 = arith.constant 0.353553385 : f32
      %13 = vector.broadcast %cst_12 : f32 to vector<16x32xf32>
      %14 = arith.mulf %12, %13 : vector<16x32xf32>
      %c0_13 = arith.constant 0 : index
      %c0_14 = arith.constant 0 : index
      %15 = vector.load %arg5[%c0_13, %c0_14] : memref<16x32xf32, #tpu.memory_space<vmem>>, vector<16x32xf32>
      tpu.vector_store %arg5[%c0_13, %c0_14], %14 {strides = array<i32>} : memref<16x32xf32, #tpu.memory_space<vmem>>, vector<16x32xf32>,
    } else {
    }
    return
  }
  func.func @transform_0(%arg0: i32, %arg1: i32, %arg2: i32) -> (i32, i32) {
    %c0_i32 = arith.constant 0 : i32
    return %arg0, %arg2 : i32, i32
  }
  func.func @transform_1(%arg0: i32, %arg1: i32, %arg2: i32) -> (i32, i32) {
    %c0_i32 = arith.constant 0 : i32
    return %arg1, %arg2 : i32, i32
  }
  func.func @transform_2(%arg0: i32, %arg1: i32, %arg2: i32) -> (i32, i32) {
    %c0_i32 = arith.constant 0 : i32
    return %arg0, %arg1 : i32, i32
  }
}

</mosaic_0001>

<bundles_post_ra>
// kernel: tpu_custom_call.1
= control target key start
LH: loop header
LB: loop body
LE: loop exit
PB: predicated region body
PF: predicated region fallthrough
CT: control target
= control target key end

     0   :  { %7 = vsyncpa [#allocation4], 0  ;;  %s283_s0 = inlined_call_operand.hbm [shape: f32[16,32], index: 0, kind: input, shape index: {}]   ;;  %s284_s1 = inlined_call_operand.hbm [shape: f32[32,32], index: 1, kind: input, shape index: {}]   ;;  %s285_s2 = inlined_call_operand.hbm [shape: f32[16,32], index: 2, kind: output, shape index: {}]  }
   0x1   :  { %8 = vsyncpa [#allocation7], 0 }
   0x2   :  { %9 = vsyncpa [#allocation5], 0  ;;  %s14_s11 = sshll.u32 %s283_s0, 4  ;;  %s228_s12 = smov [#allocation3]   ;;  %s15_s11 = int_to_ptr.hbm [resolvable:$true] %s14_s11 }
   0x3   :  { %s16_s13 = sshll.u32 %s228_s12, 4  ;;  %s27_s16 = sshll.u32 %s284_s1, 4  ;;  %s17_s13 = int_to_ptr.vmem [resolvable:$true] %s16_s13  ;;  %s28_s16 = int_to_ptr.hbm [resolvable:$true] %s27_s16 }
   0x4   :  { %s229_s17 = smov 128   ;;  %s230_s18 = smov 8  }
   0x5   :  { %22 = dma.hbm_to_vmem [thread:$0]  %s15_s11, 256, %s17_s13, [#allocation4], %s229_s17, %s229_s17, %s230_s18  }
   0x6   :  { %s231_s19 = smov [#allocation6]  }
   0x7   :  { %s29_s20 = sshll.u32 %s231_s19, 4  ;;  %s30_s20 = int_to_ptr.vmem [resolvable:$true] %s29_s20 }
   0x8   :  { %35 = dma.hbm_to_vmem [thread:$0]  %s28_s16, 512, %s30_s20, [#allocation7], %s229_s17, %s229_s17, %s230_s18  }
   0x9   :  { %222 = dma.done.wait [#allocation4], 256  }
   0xa   :  { %223 = vsyncadd [#allocation4], 4294967040 }
   0xb   :  { %224 = dma.done.wait [#allocation7], 512  }
   0xc   :  { %225 = vsyncadd [#allocation7], 4294966784  ;;  %vm48_vm0 = vcmask 261120   ;;  %v232_v0 = vmov 0.0   ;;  %v58_v1 = vld [vmem:[#allocation6 + $0x18] sm:$0xff]  ;;  %v57_v2 = vld [vmem:[#allocation6 + $0x10] sm:$0xff] }
   0xd   :  { %49 = vst.msk [vmem:[#allocation2] sm:$0xff] %vm48_vm0, %v232_v0  ;;  %134 = vmatpush.xpose.msk.msra.mxu0 %vm48_vm0, %v58_v1  ;;  %140 = vmatpush.xpose.msk.msra.mxu1 %vm48_vm0, %v58_v1  ;;  %v56_v3 = vld [vmem:[#allocation6 + $0x8] sm:$0xff]  ;;  %v55_v4 = vld [vmem:[#allocation6] sm:$0xff]  ;;  %v53_v5 = vld [vmem:[#allocation3] sm:$0xff]  ;;  %s233_s0 = smov [#allocation8]   ;;  %s120_s23 = sshll.u32 %s285_s2, 4  ;;  %s121_s23 = int_to_ptr.hbm [resolvable:$true] %s120_s23 }
   0xe   :  { %50 = vst.msk [vmem:[#allocation2 + $0x8] sm:$0xff] %vm48_vm0, %v232_v0  ;;  %v54_v6 = vld [vmem:[#allocation3 + $0x8] sm:$0xff]  ;;  %s118_s1 = sshll.u32 %s233_s0, 4  ;;  %s119_s1 = int_to_ptr.vmem [resolvable:$true] %s118_s1 }
  0x11   :  { %135 = vmatpush.xpose.msk.msra.mxu0 %vm48_vm0, %v57_v2  ;;  %141 = vmatpush.xpose.msk.msra.mxu1 %vm48_vm0, %v57_v2 }
  0x14   :  { %v51_v7 = vld [vmem:[#allocation2] sm:$0xff] }
  0x15   :  { %136 = vmatpush.xpose.msk.msra.mxu0 %vm48_vm0, %v56_v3  ;;  %142 = vmatpush.xpose.msk.msra.mxu1 %vm48_vm0, %v56_v3  ;;  %v52_v8 = vld [vmem:[#allocation2 + $0x8] sm:$0xff] }
  0x19   :  { %137 = vmatpush.xpose.msk.msra.mxu0 %vm48_vm0, %v55_v4  ;;  %143 = vmatpush.xpose.msk.msra.mxu1 %vm48_vm0, %v55_v4 }
  0x1c   :  { %138 = vmatmul.msk.f32.vlgmr.msra.gmra.mxu0 %vm48_vm0, %v53_v5  ;;  %139 = vmatmul.msk.f32.vlgmr.msra.gmra.mxu1 %vm48_vm0, %v54_v6 }
  0x99   :  { %v95_v9 = vpop.f32.mrf.mxu0  ;;  %v98_v10 = vpop.f32.mrf.mxu1 }
  0x9a   :  { %v101_v11 = vadd.f32 %v95_v9, %v51_v7  ;;  %v102_v12 = vadd.f32 %v98_v10, %v52_v8 }
  0x9c   :  { %103 = vst.msk [vmem:[#allocation2] sm:$0xff] %vm48_vm0, %v101_v11 }
  0x9d   :  { %104 = vst.msk [vmem:[#allocation2 + $0x8] sm:$0xff] %vm48_vm0, %v102_v12 }
  0xa3   :  { %v108_v13 = vld [vmem:[#allocation2] sm:$0xff] }
  0xa4   :  { %v109_v14 = vld [vmem:[#allocation2 + $0x8] sm:$0xff]  ;;  %v110_v15 = vmul.f32 0.35355338, %v108_v13 }
  0xa5   :  { %v111_v16 = vmul.f32 0.35355338, %v109_v14 }
  0xa6   :  { %112 = vst.msk [vmem:[#allocation8] sm:$0xff] %vm48_vm0, %v110_v15 }
  0xa7   :  { %113 = vst.msk [vmem:[#allocation8 + $0x8] sm:$0xff] %vm48_vm0, %v111_v16 }
  0xa8   :  { %126 = dma.vmem_to_hbm [thread:$0]  %s119_s1, 256, %s121_s23, [#allocation5], %s229_s17, %s229_s17, %s230_s18  }
  0xa9   :  { %226 = dma.done.wait [#allocation5], 256  }
  0xaa   :  { %227 = vsyncadd [#allocation5], 4294967040 }
  0xab   :  { %131 = vsyncpa [#allocation4], 1 }
  0xac   :  { %132 = vsyncpa [#allocation7], 1 }
  0xad   :  { %133 = vsyncpa [#allocation5], 1 }

</bundles_post_ra>
